<compile_context>
chip_gen: v6e
topology: v6e:2x2x1
jax: 0.10.0
libtpu: 0.0.40
codegen_flags: <defaults>
</compile_context>

<pallas_src>
import jax
import jax.numpy as jnp
from jax.experimental import pallas as pl
from jax.experimental.pallas import tpu as pltpu


def _round_up(v, m):
    return (v + m - 1) // m * m


def conv_down_forward(x, weight, K, stride, pad, compute_dtype=None):
    """x: (N, Cin, H, W) NCHW, weight: (Cout, Cin, K, K) OIHW."""
    N, Cin, H, W = x.shape
    Cout = weight.shape[0]
    s = stride
    assert K % s == 0, "kernel size must be a multiple of the stride"
    A = K // s                                   # kernel extent after space-to-depth
    AA = A * A
    Ho = (H + 2 * pad - K) // s + 1
    Wo = (W + 2 * pad - K) // s + 1

    # ---- geometry of the space-to-depth view ----
    Hp = _round_up(H + 2 * pad, s)
    Wp = _round_up(W + 2 * pad, s)
    Hq, Wq = Hp // s, Wp // s
    assert Hq >= Ho + A - 1 and Wq >= Wo + A - 1
    Cs = s * s * Cin                             # channels after space-to-depth
    L = Hq * Wq
    T = Ho * Wq                                  # flat spatial length incl. wrap cols
    max_off = (A - 1) * (Wq + 1)
    Lp = _round_up(max(T + max_off, L), 128)     # 128-aligned lane extent

    cdt = x.dtype if compute_dtype is None else jnp.dtype(compute_dtype)
    out_dtype = x.dtype

    # ---- wrapper-side pad + space-to-depth (ONE fused XLA copy pass) ----
    # (N, Cin, Hp, Wp) -> (N, rh, rw, Cin, Hq, Wq) -> (N, Cs, Lp)
    x_pad = jnp.pad(x, ((0, 0), (0, 0),
                        (pad, Hp - H - pad), (pad, Wp - W - pad)))
    x_s2d = x_pad.reshape(N, Cin, Hq, s, Wq, s).transpose(0, 3, 5, 1, 2, 4)
    x_flat = x_s2d.reshape(N, Cs, L)
    if Lp > L:
        x_flat = jnp.pad(x_flat, ((0, 0), (0, 0), (0, Lp - L)))
    x_flat = x_flat.astype(cdt)

    # ---- fused weights: (Cout, A*A*Cs), slab idx = a*A+b, ch = (rh,rw,ci) ----
    w6 = weight.reshape(Cout, Cin, A, s, A, s)           # (co, ci, a, rh, b, rw)
    w_cat = w6.transpose(0, 2, 4, 3, 5, 1).reshape(Cout, AA * Cs).astype(cdt)

    inv_count = 1.0 / float(Ho * Wo)
    eps = 1e-5

    def kernel(x_ref, w_ref, o_ref, opnd_ref):
        # x_ref: (Cs, Lp)  w_ref: (Cout, AA*Cs)  o_ref: (Cout, Ho*Wo)
        # opnd_ref: (AA*Cs, T) VMEM scratch.
        # 1) assemble the fused operand from A*A shifted views (no HBM traffic,
        #    sublane-aligned scratch writes, static lane offsets).
        for idx in range(AA):
            off = (idx // A) * Wq + (idx % A)
            opnd_ref[pl.ds(idx * Cs, Cs), :] = x_ref[:, pl.ds(off, T)]

        # 2) one fused matmul on the MXU, f32 accumulation.
        acc = jnp.dot(w_ref[...], opnd_ref[...],
                      preferred_element_type=jnp.float32)      # (Cout, T)

        # 3) drop the row-wrap columns with static slices (reused below).
        rows = [acc[:, oh * Wq: oh * Wq + Wo] for oh in range(Ho)]

        # 4) InstanceNorm stats over the Ho*Wo valid positions, two-pass
        #    (centered) variance in f32 -> no E[x^2]-mean^2 cancellation.
        s1 = rows[0].sum(axis=1, keepdims=True)
        for r in rows[1:]:
            s1 = s1 + r.sum(axis=1, keepdims=True)
        mean = s1 * inv_count
        s2 = None
        for r in rows:
            d = r - mean
            p = (d * d).sum(axis=1, keepdims=True)
            s2 = p if s2 is None else s2 + p
        scale = jax.lax.rsqrt(s2 * inv_count + eps)

        # 5) normalize + LeakyReLU(0.2) and store only valid columns,
        #    packed densely into the (Cout, Ho*Wo) output block.
        for oh, r in enumerate(rows):
            y = (r - mean) * scale
            y = jnp.maximum(y, 0.2 * y)
            o_ref[:, pl.ds(oh * Wo, Wo)] = y.astype(o_ref.dtype)

    # ---- explicit VMEM budget from the buffer footprint ----
    isz = jnp.dtype(cdt).itemsize
    footprint = (2 * Cs * Lp * isz                              # dbl-buffered input
                 + 2 * Cout * AA * Cs * isz                     # weights
                 + 2 * Cout * Ho * Wo * jnp.dtype(out_dtype).itemsize  # output
                 + AA * Cs * T * isz                            # operand scratch
                 + 4 * Cout * T * 4)                            # f32 acc + temps
    vmem_limit = int(min(max(2 * footprint, 32 * 2 ** 20), 64 * 2 ** 20))

    out_flat = pl.pallas_call(
        kernel,
        out_shape=jax.ShapeDtypeStruct((N, Cout, Ho * Wo), out_dtype),
        grid_spec=pltpu.PrefetchScalarGridSpec(
            num_scalar_prefetch=0,
            grid=(N,),
            in_specs=[
                pl.BlockSpec((None, Cs, Lp), lambda n: (n, 0, 0)),
                pl.BlockSpec((Cout, AA * Cs), lambda n: (0, 0)),
            ],
            out_specs=pl.BlockSpec((None, Cout, Ho * Wo), lambda n: (n, 0, 0)),
            scratch_shapes=[pltpu.VMEM((AA * Cs, T), cdt)],
        ),
        compiler_params=pltpu.CompilerParams(
            dimension_semantics=("parallel",),
            vmem_limit_bytes=vmem_limit),
    )(x_flat, w_cat)

    # Free reshape (no data movement): (N, Cout, Ho*Wo) -> (N, Cout, Ho, Wo).
    return out_flat.reshape(N, Cout, Ho, Wo)


def _reference(x, weight, K, stride, pad):
    y = jax.lax.conv_general_dilated(
        x, weight, (stride, stride), ((pad, pad), (pad, pad)),
        dimension_numbers=("NCHW", "OIHW", "NCHW"))
    mean = y.mean(axis=(2, 3), keepdims=True)
    var = jnp.mean((y - mean) ** 2, axis=(2, 3), keepdims=True)
    yn = (y - mean) / jnp.sqrt(var + 1e-5)
    return jnp.where(yn > 0, yn, 0.2 * yn)


if __name__ == "__main__":
    # ConvDown(in_c=4, out_c=8, kernel=4, stride=2, padding=1), layers=1,
    # activ=True -> Conv2d(4, 8, 4, 2, 1, bias=False) + InstanceNorm2d(8)
    # + LeakyReLU(0.2)
    in_c, out_mult, K, stride, pad = 4, 2, 4, 2, 1
    cout = out_mult * in_c                       # nf_mult * in_c = 2 * 4 = 8
    N, H, W = 2, 16, 16

    key = jax.random.PRNGKey(0)
    kx, kw = jax.random.split(key)
    x = jax.random.normal(kx, (N, in_c, H, W), dtype=jnp.float32)
    fan_in = in_c * K * K
    bound = 1.0 / jnp.sqrt(fan_in)
    weight = jax.random.uniform(kw, (cout, in_c, K, K), jnp.float32, -bound, bound)

    out = conv_down_forward(x, weight, K, stride, pad)
    out = jax.block_until_ready(out)

    ref = _reference(x, weight, K, stride, pad)
    assert out.shape == ref.shape == (N, cout, H // 2, W // 2)
    assert jnp.allclose(out, ref, atol=1e-4, rtol=1e-4)

    print("KERNEL_OK")
</pallas_src>

<mosaic_0001>
module attributes {stable_mosaic.version = 11 : i64} {
  func.func @kernel(%arg0: i32, %arg1: memref<1x16x128xf32, #tpu.memory_space<vmem>>, %arg2: memref<8x64xf32, #tpu.memory_space<vmem>>, %arg3: memref<1x8x64xf32, #tpu.memory_space<vmem>>, %arg4: memref<64x72xf32, #tpu.memory_space<vmem>>) attributes {dimension_semantics = [#tpu.dimension_semantics<parallel>], iteration_bounds = array<i64: 2>, scalar_prefetch = 0 : i64, scratch_operands = 1 : i64, tpu.core_type = #tpu.core_type<tc>, window_params = [{transform_indices = @transform_0, window_bounds = array<i64: 1, 16, 128>}, {pipeline_mode = #tpu.pipeline_mode<synchronous>, transform_indices = @transform_1, window_bounds = array<i64: 8, 64>}, {transform_indices = @transform_2, window_bounds = array<i64: 1, 8, 64>}]} {
    %c0 = arith.constant 0 : index
    %c0_0 = arith.constant 0 : index
    %c0_1 = arith.constant 0 : index
    %0 = vector.load %arg1[%c0, %c0_0, %c0_1] : memref<1x16x128xf32, #tpu.memory_space<vmem>>, vector<1x16x72xf32>
    %1 = vector.shape_cast %0 : vector<1x16x72xf32> to vector<16x72xf32>
    %c0_2 = arith.constant 0 : index
    %c0_3 = arith.constant 0 : index
    %2 = vector.load %arg4[%c0_2, %c0_3] : memref<64x72xf32, #tpu.memory_space<vmem>>, vector<16x72xf32>
    tpu.vector_store %arg4[%c0_2, %c0_3], %1 {strides = array<i32>} : memref<64x72xf32, #tpu.memory_space<vmem>>, vector<16x72xf32>,
    %c0_4 = arith.constant 0 : index
    %c0_5 = arith.constant 0 : index
    %c1 = arith.constant 1 : index
    %3 = vector.load %arg1[%c0_4, %c0_5, %c1] : memref<1x16x128xf32, #tpu.memory_space<vmem>>, vector<1x16x72xf32>
    %4 = vector.shape_cast %3 : vector<1x16x72xf32> to vector<16x72xf32>
    %c16 = arith.constant 16 : index
    %c0_6 = arith.constant 0 : index
    %5 = vector.load %arg4[%c16, %c0_6] : memref<64x72xf32, #tpu.memory_space<vmem>>, vector<16x72xf32>
    tpu.vector_store %arg4[%c16, %c0_6], %4 {strides = array<i32>} : memref<64x72xf32, #tpu.memory_space<vmem>>, vector<16x72xf32>,
    %c0_7 = arith.constant 0 : index
    %c0_8 = arith.constant 0 : index
    %c9 = arith.constant 9 : index
    %6 = vector.load %arg1[%c0_7, %c0_8, %c9] : memref<1x16x128xf32, #tpu.memory_space<vmem>>, vector<1x16x72xf32>
    %7 = vector.shape_cast %6 : vector<1x16x72xf32> to vector<16x72xf32>
    %c32 = arith.constant 32 : index
    %c0_9 = arith.constant 0 : index
    %8 = vector.load %arg4[%c32, %c0_9] : memref<64x72xf32, #tpu.memory_space<vmem>>, vector<16x72xf32>
    tpu.vector_store %arg4[%c32, %c0_9], %7 {strides = array<i32>} : memref<64x72xf32, #tpu.memory_space<vmem>>, vector<16x72xf32>,
    %c0_10 = arith.constant 0 : index
    %c0_11 = arith.constant 0 : index
    %c10 = arith.constant 10 : index
    %9 = vector.load %arg1[%c0_10, %c0_11, %c10] : memref<1x16x128xf32, #tpu.memory_space<vmem>>, vector<1x16x72xf32>
    %10 = vector.shape_cast %9 : vector<1x16x72xf32> to vector<16x72xf32>
    %c48 = arith.constant 48 : index
    %c0_12 = arith.constant 0 : index
    %11 = vector.load %arg4[%c48, %c0_12] : memref<64x72xf32, #tpu.memory_space<vmem>>, vector<16x72xf32>
    tpu.vector_store %arg4[%c48, %c0_12], %10 {strides = array<i32>} : memref<64x72xf32, #tpu.memory_space<vmem>>, vector<16x72xf32>,
    %c0_13 = arith.constant 0 : index
    %c0_14 = arith.constant 0 : index
    %12 = vector.load %arg2[%c0_13, %c0_14] : memref<8x64xf32, #tpu.memory_space<vmem>>, vector<8x64xf32>
    %c0_15 = arith.constant 0 : index
    %c0_16 = arith.constant 0 : index
    %13 = vector.load %arg4[%c0_15, %c0_16] : memref<64x72xf32, #tpu.memory_space<vmem>>, vector<64x72xf32>
    %cst = arith.constant dense<0.000000e+00> : vector<8x72xf32>
    %14 = tpu.matmul %12, %13, %cst {dimension_numbers = #tpu.dot_dimension_numbers<[1], [0], [0], [1], [0, 0, 1, 1], [], []>} : vector<8x64xf32>, vector<64x72xf32>, vector<8x72xf32> -> vector<8x72xf32>
    %15 = vector.extract_strided_slice %14 {offsets = [0, 0], sizes = [8, 8], strides = [1, 1]} : vector<8x72xf32> to vector<8x8xf32>
    %16 = vector.extract_strided_slice %14 {offsets = [0, 9], sizes = [8, 8], strides = [1, 1]} : vector<8x72xf32> to vector<8x8xf32>
    %17 = vector.extract_strided_slice %14 {offsets = [0, 18], sizes = [8, 8], strides = [1, 1]} : vector<8x72xf32> to vector<8x8xf32>
    %18 = vector.extract_strided_slice %14 {offsets = [0, 27], sizes = [8, 8], strides = [1, 1]} : vector<8x72xf32> to vector<8x8xf32>
    %19 = vector.extract_strided_slice %14 {offsets = [0, 36], sizes = [8, 8], strides = [1, 1]} : vector<8x72xf32> to vector<8x8xf32>
    %20 = vector.extract_strided_slice %14 {offsets = [0, 45], sizes = [8, 8], strides = [1, 1]} : vector<8x72xf32> to vector<8x8xf32>
    %21 = vector.extract_strided_slice %14 {offsets = [0, 54], sizes = [8, 8], strides = [1, 1]} : vector<8x72xf32> to vector<8x8xf32>
    %22 = vector.extract_strided_slice %14 {offsets = [0, 63], sizes = [8, 8], strides = [1, 1]} : vector<8x72xf32> to vector<8x8xf32>
    %cst_17 = arith.constant dense<0.000000e+00> : vector<8xf32>
    %23 = vector.multi_reduction <add>, %15, %cst_17 [1] : vector<8x8xf32> to vector<8xf32>
    %24 = vector.shape_cast %23 : vector<8xf32> to vector<8x1xf32>
    %cst_18 = arith.constant dense<0.000000e+00> : vector<8xf32>
    %25 = vector.multi_reduction <add>, %16, %cst_18 [1] : vector<8x8xf32> to vector<8xf32>
    %26 = vector.shape_cast %25 : vector<8xf32> to vector<8x1xf32>
    %27 = arith.addf %24, %26 : vector<8x1xf32>
    %cst_19 = arith.constant dense<0.000000e+00> : vector<8xf32>
    %28 = vector.multi_reduction <add>, %17, %cst_19 [1] : vector<8x8xf32> to vector<8xf32>
    %29 = vector.shape_cast %28 : vector<8xf32> to vector<8x1xf32>
    %30 = arith.addf %27, %29 : vector<8x1xf32>
    %cst_20 = arith.constant dense<0.000000e+00> : vector<8xf32>
    %31 = vector.multi_reduction <add>, %18, %cst_20 [1] : vector<8x8xf32> to vector<8xf32>
    %32 = vector.shape_cast %31 : vector<8xf32> to vector<8x1xf32>
    %33 = arith.addf %30, %32 : vector<8x1xf32>
    %cst_21 = arith.constant dense<0.000000e+00> : vector<8xf32>
    %34 = vector.multi_reduction <add>, %19, %cst_21 [1] : vector<8x8xf32> to vector<8xf32>
    %35 = vector.shape_cast %34 : vector<8xf32> to vector<8x1xf32>
    %36 = arith.addf %33, %35 : vector<8x1xf32>
    %cst_22 = arith.constant dense<0.000000e+00> : vector<8xf32>
    %37 = vector.multi_reduction <add>, %20, %cst_22 [1] : vector<8x8xf32> to vector<8xf32>
    %38 = vector.shape_cast %37 : vector<8xf32> to vector<8x1xf32>
    %39 = arith.addf %36, %38 : vector<8x1xf32>
    %cst_23 = arith.constant dense<0.000000e+00> : vector<8xf32>
    %40 = vector.multi_reduction <add>, %21, %cst_23 [1] : vector<8x8xf32> to vector<8xf32>
    %41 = vector.shape_cast %40 : vector<8xf32> to vector<8x1xf32>
    %42 = arith.addf %39, %41 : vector<8x1xf32>
    %cst_24 = arith.constant dense<0.000000e+00> : vector<8xf32>
    %43 = vector.multi_reduction <add>, %22, %cst_24 [1] : vector<8x8xf32> to vector<8xf32>
    %44 = vector.shape_cast %43 : vector<8xf32> to vector<8x1xf32>
    %45 = arith.addf %42, %44 : vector<8x1xf32>
    %cst_25 = arith.constant 1.562500e-02 : f32
    %46 = vector.broadcast %cst_25 : f32 to vector<8x1xf32>
    %47 = arith.mulf %45, %46 : vector<8x1xf32>
    %48 = vector.broadcast %47 : vector<8x1xf32> to vector<8x8xf32>
    %49 = arith.subf %15, %48 : vector<8x8xf32>
    %50 = arith.mulf %49, %49 : vector<8x8xf32>
    %cst_26 = arith.constant dense<0.000000e+00> : vector<8xf32>
    %51 = vector.multi_reduction <add>, %50, %cst_26 [1] : vector<8x8xf32> to vector<8xf32>
    %52 = vector.shape_cast %51 : vector<8xf32> to vector<8x1xf32>
    %53 = vector.broadcast %47 : vector<8x1xf32> to vector<8x8xf32>
    %54 = arith.subf %16, %53 : vector<8x8xf32>
    %55 = arith.mulf %54, %54 : vector<8x8xf32>
    %cst_27 = arith.constant dense<0.000000e+00> : vector<8xf32>
    %56 = vector.multi_reduction <add>, %55, %cst_27 [1] : vector<8x8xf32> to vector<8xf32>
    %57 = vector.shape_cast %56 : vector<8xf32> to vector<8x1xf32>
    %58 = arith.addf %52, %57 : vector<8x1xf32>
    %59 = vector.broadcast %47 : vector<8x1xf32> to vector<8x8xf32>
    %60 = arith.subf %17, %59 : vector<8x8xf32>
    %61 = arith.mulf %60, %60 : vector<8x8xf32>
    %cst_28 = arith.constant dense<0.000000e+00> : vector<8xf32>
    %62 = vector.multi_reduction <add>, %61, %cst_28 [1] : vector<8x8xf32> to vector<8xf32>
    %63 = vector.shape_cast %62 : vector<8xf32> to vector<8x1xf32>
    %64 = arith.addf %58, %63 : vector<8x1xf32>
    %65 = vector.broadcast %47 : vector<8x1xf32> to vector<8x8xf32>
    %66 = arith.subf %18, %65 : vector<8x8xf32>
    %67 = arith.mulf %66, %66 : vector<8x8xf32>
    %cst_29 = arith.constant dense<0.000000e+00> : vector<8xf32>
    %68 = vector.multi_reduction <add>, %67, %cst_29 [1] : vector<8x8xf32> to vector<8xf32>
    %69 = vector.shape_cast %68 : vector<8xf32> to vector<8x1xf32>
    %70 = arith.addf %64, %69 : vector<8x1xf32>
    %71 = vector.broadcast %47 : vector<8x1xf32> to vector<8x8xf32>
    %72 = arith.subf %19, %71 : vector<8x8xf32>
    %73 = arith.mulf %72, %72 : vector<8x8xf32>
    %cst_30 = arith.constant dense<0.000000e+00> : vector<8xf32>
    %74 = vector.multi_reduction <add>, %73, %cst_30 [1] : vector<8x8xf32> to vector<8xf32>
    %75 = vector.shape_cast %74 : vector<8xf32> to vector<8x1xf32>
    %76 = arith.addf %70, %75 : vector<8x1xf32>
    %77 = vector.broadcast %47 : vector<8x1xf32> to vector<8x8xf32>
    %78 = arith.subf %20, %77 : vector<8x8xf32>
    %79 = arith.mulf %78, %78 : vector<8x8xf32>
    %cst_31 = arith.constant dense<0.000000e+00> : vector<8xf32>
    %80 = vector.multi_reduction <add>, %79, %cst_31 [1] : vector<8x8xf32> to vector<8xf32>
    %81 = vector.shape_cast %80 : vector<8xf32> to vector<8x1xf32>
    %82 = arith.addf %76, %81 : vector<8x1xf32>
    %83 = vector.broadcast %47 : vector<8x1xf32> to vector<8x8xf32>
    %84 = arith.subf %21, %83 : vector<8x8xf32>
    %85 = arith.mulf %84, %84 : vector<8x8xf32>
    %cst_32 = arith.constant dense<0.000000e+00> : vector<8xf32>
    %86 = vector.multi_reduction <add>, %85, %cst_32 [1] : vector<8x8xf32> to vector<8xf32>
    %87 = vector.shape_cast %86 : vector<8xf32> to vector<8x1xf32>
    %88 = arith.addf %82, %87 : vector<8x1xf32>
    %89 = vector.broadcast %47 : vector<8x1xf32> to vector<8x8xf32>
    %90 = arith.subf %22, %89 : vector<8x8xf32>
    %91 = arith.mulf %90, %90 : vector<8x8xf32>
    %cst_33 = arith.constant dense<0.000000e+00> : vector<8xf32>
    %92 = vector.multi_reduction <add>, %91, %cst_33 [1] : vector<8x8xf32> to vector<8xf32>
    %93 = vector.shape_cast %92 : vector<8xf32> to vector<8x1xf32>
    %94 = arith.addf %88, %93 : vector<8x1xf32>
    %cst_34 = arith.constant 1.562500e-02 : f32
    %95 = vector.broadcast %cst_34 : f32 to vector<8x1xf32>
    %96 = arith.mulf %94, %95 : vector<8x1xf32>
    %cst_35 = arith.constant 9.99999974E-6 : f32
    %97 = vector.broadcast %cst_35 : f32 to vector<8x1xf32>
    %98 = arith.addf %96, %97 : vector<8x1xf32>
    %99 = math.rsqrt %98 : vector<8x1xf32>
    %100 = vector.broadcast %47 : vector<8x1xf32> to vector<8x8xf32>
    %101 = arith.subf %15, %100 : vector<8x8xf32>
    %102 = vector.broadcast %99 : vector<8x1xf32> to vector<8x8xf32>
    %103 = arith.mulf %101, %102 : vector<8x8xf32>
    %cst_36 = arith.constant 2.000000e-01 : f32
    %104 = vector.broadcast %cst_36 : f32 to vector<8x8xf32>
    %105 = arith.mulf %104, %103 : vector<8x8xf32>
    %106 = arith.maximumf %103, %105 : vector<8x8xf32>
    %c0_37 = arith.constant 0 : index
    %c0_38 = arith.constant 0 : index
    %c0_39 = arith.constant 0 : index
    %107 = vector.load %arg3[%c0_37, %c0_38, %c0_39] : memref<1x8x64xf32, #tpu.memory_space<vmem>>, vector<1x8x8xf32>
    %108 = vector.shape_cast %107 : vector<1x8x8xf32> to vector<8x8xf32>
    %109 = vector.shape_cast %106 : vector<8x8xf32> to vector<1x8x8xf32>
    tpu.vector_store %arg3[%c0_37, %c0_38, %c0_39], %109 {strides = array<i32>} : memref<1x8x64xf32, #tpu.memory_space<vmem>>, vector<1x8x8xf32>,
    %110 = vector.broadcast %47 : vector<8x1xf32> to vector<8x8xf32>
    %111 = arith.subf %16, %110 : vector<8x8xf32>
    %112 = vector.broadcast %99 : vector<8x1xf32> to vector<8x8xf32>
    %113 = arith.mulf %111, %112 : vector<8x8xf32>
    %cst_40 = arith.constant 2.000000e-01 : f32
    %114 = vector.broadcast %cst_40 : f32 to vector<8x8xf32>
    %115 = arith.mulf %114, %113 : vector<8x8xf32>
    %116 = arith.maximumf %113, %115 : vector<8x8xf32>
    %c0_41 = arith.constant 0 : index
    %c0_42 = arith.constant 0 : index
    %c8 = arith.constant 8 : index
    %117 = vector.load %arg3[%c0_41, %c0_42, %c8] : memref<1x8x64xf32, #tpu.memory_space<vmem>>, vector<1x8x8xf32>
    %118 = vector.shape_cast %117 : vector<1x8x8xf32> to vector<8x8xf32>
    %119 = vector.shape_cast %116 : vector<8x8xf32> to vector<1x8x8xf32>
    tpu.vector_store %arg3[%c0_41, %c0_42, %c8], %119 {strides = array<i32>} : memref<1x8x64xf32, #tpu.memory_space<vmem>>, vector<1x8x8xf32>,
    %120 = vector.broadcast %47 : vector<8x1xf32> to vector<8x8xf32>
    %121 = arith.subf %17, %120 : vector<8x8xf32>
    %122 = vector.broadcast %99 : vector<8x1xf32> to vector<8x8xf32>
    %123 = arith.mulf %121, %122 : vector<8x8xf32>
    %cst_43 = arith.constant 2.000000e-01 : f32
    %124 = vector.broadcast %cst_43 : f32 to vector<8x8xf32>
    %125 = arith.mulf %124, %123 : vector<8x8xf32>
    %126 = arith.maximumf %123, %125 : vector<8x8xf32>
    %c0_44 = arith.constant 0 : index
    %c0_45 = arith.constant 0 : index
    %c16_46 = arith.constant 16 : index
    %127 = vector.load %arg3[%c0_44, %c0_45, %c16_46] : memref<1x8x64xf32, #tpu.memory_space<vmem>>, vector<1x8x8xf32>
    %128 = vector.shape_cast %127 : vector<1x8x8xf32> to vector<8x8xf32>
    %129 = vector.shape_cast %126 : vector<8x8xf32> to vector<1x8x8xf32>
    tpu.vector_store %arg3[%c0_44, %c0_45, %c16_46], %129 {strides = array<i32>} : memref<1x8x64xf32, #tpu.memory_space<vmem>>, vector<1x8x8xf32>,
    %130 = vector.broadcast %47 : vector<8x1xf32> to vector<8x8xf32>
    %131 = arith.subf %18, %130 : vector<8x8xf32>
    %132 = vector.broadcast %99 : vector<8x1xf32> to vector<8x8xf32>
    %133 = arith.mulf %131, %132 : vector<8x8xf32>
    %cst_47 = arith.constant 2.000000e-01 : f32
    %134 = vector.broadcast %cst_47 : f32 to vector<8x8xf32>
    %135 = arith.mulf %134, %133 : vector<8x8xf32>
    %136 = arith.maximumf %133, %135 : vector<8x8xf32>
    %c0_48 = arith.constant 0 : index
    %c0_49 = arith.constant 0 : index
    %c24 = arith.constant 24 : index
    %137 = vector.load %arg3[%c0_48, %c0_49, %c24] : memref<1x8x64xf32, #tpu.memory_space<vmem>>, vector<1x8x8xf32>
    %138 = vector.shape_cast %137 : vector<1x8x8xf32> to vector<8x8xf32>
    %139 = vector.shape_cast %136 : vector<8x8xf32> to vector<1x8x8xf32>
    tpu.vector_store %arg3[%c0_48, %c0_49, %c24], %139 {strides = array<i32>} : memref<1x8x64xf32, #tpu.memory_space<vmem>>, vector<1x8x8xf32>,
    %140 = vector.broadcast %47 : vector<8x1xf32> to vector<8x8xf32>
    %141 = arith.subf %19, %140 : vector<8x8xf32>
    %142 = vector.broadcast %99 : vector<8x1xf32> to vector<8x8xf32>
    %143 = arith.mulf %141, %142 : vector<8x8xf32>
    %cst_50 = arith.constant 2.000000e-01 : f32
    %144 = vector.broadcast %cst_50 : f32 to vector<8x8xf32>
    %145 = arith.mulf %144, %143 : vector<8x8xf32>
    %146 = arith.maximumf %143, %145 : vector<8x8xf32>
    %c0_51 = arith.constant 0 : index
    %c0_52 = arith.constant 0 : index
    %c32_53 = arith.constant 32 : index
    %147 = vector.load %arg3[%c0_51, %c0_52, %c32_53] : memref<1x8x64xf32, #tpu.memory_space<vmem>>, vector<1x8x8xf32>
    %148 = vector.shape_cast %147 : vector<1x8x8xf32> to vector<8x8xf32>
    %149 = vector.shape_cast %146 : vector<8x8xf32> to vector<1x8x8xf32>
    tpu.vector_store %arg3[%c0_51, %c0_52, %c32_53], %149 {strides = array<i32>} : memref<1x8x64xf32, #tpu.memory_space<vmem>>, vector<1x8x8xf32>,
    %150 = vector.broadcast %47 : vector<8x1xf32> to vector<8x8xf32>
    %151 = arith.subf %20, %150 : vector<8x8xf32>
    %152 = vector.broadcast %99 : vector<8x1xf32> to vector<8x8xf32>
    %153 = arith.mulf %151, %152 : vector<8x8xf32>
    %cst_54 = arith.constant 2.000000e-01 : f32
    %154 = vector.broadcast %cst_54 : f32 to vector<8x8xf32>
    %155 = arith.mulf %154, %153 : vector<8x8xf32>
    %156 = arith.maximumf %153, %155 : vector<8x8xf32>
    %c0_55 = arith.constant 0 : index
    %c0_56 = arith.constant 0 : index
    %c40 = arith.constant 40 : index
    %157 = vector.load %arg3[%c0_55, %c0_56, %c40] : memref<1x8x64xf32, #tpu.memory_space<vmem>>, vector<1x8x8xf32>
    %158 = vector.shape_cast %157 : vector<1x8x8xf32> to vector<8x8xf32>
    %159 = vector.shape_cast %156 : vector<8x8xf32> to vector<1x8x8xf32>
    tpu.vector_store %arg3[%c0_55, %c0_56, %c40], %159 {strides = array<i32>} : memref<1x8x64xf32, #tpu.memory_space<vmem>>, vector<1x8x8xf32>,
    %160 = vector.broadcast %47 : vector<8x1xf32> to vector<8x8xf32>
    %161 = arith.subf %21, %160 : vector<8x8xf32>
    %162 = vector.broadcast %99 : vector<8x1xf32> to vector<8x8xf32>
    %163 = arith.mulf %161, %162 : vector<8x8xf32>
    %cst_57 = arith.constant 2.000000e-01 : f32
    %164 = vector.broadcast %cst_57 : f32 to vector<8x8xf32>
    %165 = arith.mulf %164, %163 : vector<8x8xf32>
    %166 = arith.maximumf %163, %165 : vector<8x8xf32>
    %c0_58 = arith.constant 0 : index
    %c0_59 = arith.constant 0 : index
    %c48_60 = arith.constant 48 : index
    %167 = vector.load %arg3[%c0_58, %c0_59, %c48_60] : memref<1x8x64xf32, #tpu.memory_space<vmem>>, vector<1x8x8xf32>
    %168 = vector.shape_cast %167 : vector<1x8x8xf32> to vector<8x8xf32>
    %169 = vector.shape_cast %166 : vector<8x8xf32> to vector<1x8x8xf32>
    tpu.vector_store %arg3[%c0_58, %c0_59, %c48_60], %169 {strides = array<i32>} : memref<1x8x64xf32, #tpu.memory_space<vmem>>, vector<1x8x8xf32>,
    %170 = vector.broadcast %47 : vector<8x1xf32> to vector<8x8xf32>
    %171 = arith.subf %22, %170 : vector<8x8xf32>
    %172 = vector.broadcast %99 : vector<8x1xf32> to vector<8x8xf32>
    %173 = arith.mulf %171, %172 : vector<8x8xf32>
    %cst_61 = arith.constant 2.000000e-01 : f32
    %174 = vector.broadcast %cst_61 : f32 to vector<8x8xf32>
    %175 = arith.mulf %174, %173 : vector<8x8xf32>
    %176 = arith.maximumf %173, %175 : vector<8x8xf32>
    %c0_62 = arith.constant 0 : index
    %c0_63 = arith.constant 0 : index
    %c56 = arith.constant 56 : index
    %177 = vector.load %arg3[%c0_62, %c0_63, %c56] : memref<1x8x64xf32, #tpu.memory_space<vmem>>, vector<1x8x8xf32>
    %178 = vector.shape_cast %177 : vector<1x8x8xf32> to vector<8x8xf32>
    %179 = vector.shape_cast %176 : vector<8x8xf32> to vector<1x8x8xf32>
    tpu.vector_store %arg3[%c0_62, %c0_63, %c56], %179 {strides = array<i32>} : memref<1x8x64xf32, #tpu.memory_space<vmem>>, vector<1x8x8xf32>,
    return
  }
  func.func @transform_0(%arg0: i32) -> (i32, i32, i32) {
    %c0_i32 = arith.constant 0 : i32
    %c0_i32_0 = arith.constant 0 : i32
    %c0_i32_1 = arith.constant 0 : i32
    return %arg0, %c0_i32, %c0_i32_0 : i32, i32, i32
  }
  func.func @transform_1(%arg0: i32) -> (i32, i32) {
    %c0_i32 = arith.constant 0 : i32
    %c0_i32_0 = arith.constant 0 : i32
    %c0_i32_1 = arith.constant 0 : i32
    return %c0_i32, %c0_i32_0 : i32, i32
  }
  func.func @transform_2(%arg0: i32) -> (i32, i32, i32) {
    %c0_i32 = arith.constant 0 : i32
    %c0_i32_0 = arith.constant 0 : i32
    %c0_i32_1 = arith.constant 0 : i32
    return %arg0, %c0_i32, %c0_i32_0 : i32, i32, i32
  }
}

</mosaic_0001>

<bundles_post_ra>
// kernel: tpu_custom_call.1
= control target key start
LH: loop header
LB: loop body
LE: loop exit
PB: predicated region body
PF: predicated region fallthrough
CT: control target
= control target key end

     0   :  { %7 = vsyncpa [#allocation4], 0  ;;  %s1065_s0 = inlined_call_operand.hbm [shape: f32[2,16,128], index: 0, kind: input, shape index: {}]   ;;  %s1066_s1 = inlined_call_operand.hbm [shape: f32[8,64], index: 1, kind: input, shape index: {}]   ;;  %s1067_s2 = inlined_call_operand.hbm [shape: f32[2,8,64], index: 2, kind: output, shape index: {}]  }
   0x1   :  { %9 = vsyncpa [#allocation4 + $0x1], 0 }
   0x2   :  { %10 = vsyncpa [#allocation7], 0 }
   0x3   :  { %11 = vsyncpa [#allocation5], 0 }
   0x4   :  { %13 = vsyncpa [#allocation5 + $0x1], 0  ;;  %s830_s9 = smov 0   ;;  %s832_s10 = smov 0  }
   0x5   :  { %s834_s11 = smov 0   ;;  %s836_s12 = smov 0  }
   0x6 LB: > { %s851_s13 = sadd.s32 4294967295, %s791_s12   ;;  %s546_s14 = sadd.s32 4294967294, %s791_s12   ;;  %s791_s12 = sphi %s836_s12, %s1090_s12   ;;  %s787_s11 = sphi %s834_s11, %s1089_s11   ;;  %s783_s10 = sphi %s832_s10, %s1088_s10   ;;  %s779_s9 = sphi %s830_s9, %s1087_s9  }
   0x7   : > { %s855_s15 = sadd.s32 1, %s791_s12   ;;  %s26_s16 = sadd.s32 1, %s787_s11 }
   0x8   : > { %s23_s17 = ssub.s32 %s791_s12, %s855_s15  ;;  %p33_p0 = scmp.ne.s32.totalorder %s787_s11, %s783_s10 }
   0x9   : > { %p24_p1 = scmp.eq.s32.totalorder %s23_s17, 0  ;;  %p34_p2 = scmp.eq.s32.totalorder %s791_s12, 0 }
   0xa   : > { %p39_p3 = scmp.ne.s32.totalorder %s783_s10, %s779_s9  ;;  %p1068_p4 = scmp.eq.s32.totalorder %s851_s13, 0 }
   0xb   : > { %s867_s18 = scalar_select %p24_p1, %s787_s11, %s26_s16  }
   0xc   : > { %p869_p5 = por %p34_p2, %p33_p0  ;;  %p875_p6 = por %p1068_p4, %p39_p3 }
   0xd   : > { %p84_p7 = scmp.eq.s32.totalorder %s851_s13, 1  ;;  %p90_p8 = scmp.eq.s32.totalorder %s546_s14, 1 }
   0xe   : > { %s1073_s20 = scalar_select %p875_p6, 1, 0 }
   0xf   : > { %p547_p9 = scmp.ge.s32.totalorder %s791_s12, 1  ;;  %p97_p10 = scmp.lt.s32.totalorder %s791_s12, 3 }
  0x10   : > { %p882_p11 = por %p84_p7, %p33_p0  ;;  %p886_p12 = por %p90_p8, %p39_p3 }
  0x11   : > { %p890_p13 = pnand %p547_p9, %p97_p10  ;;  %s793_s24 = smov [#allocation6]  }
  0x12   : > { %s1074_s21 = scalar_select %p882_p11, 1, 0 }
  0x13   : > { %s1075_s22 = scalar_select %p886_p12, 1, 0 }
  0x14   : > { %s1076_s23 = scalar_select %p890_p13, 1, 0 }
  0x15   : > { %p599_p2 = pneg %p890_p13  ;;  %s110_s25 = sshll.u32 %s793_s24, 4  ;;  %s111_s25 = int_to_ptr.vmem [resolvable:$true] %s110_s25 }
  0x16   : > { %p612_p4 = scmp.lt.s32.totalorder %s791_s12, 2  ;;  %p1077_p0 = scmp.eq.s32.totalorder %s851_s13, 0 }
  0x17   : > { %s121_s27 = sand.u32 1, %s787_s11   ;;  %s680_s30 = scalar_lea.vmem %s111_s25, 128 }
  0x18   : > { %p900_p7 = pnand %p599_p2, %p1077_p0  ;;  %p907_p3 = pnand %p612_p4, %p869_p5 }
  0x19   : > { %s550_s29 = sshll.u32 %s121_s27, 4  ;;  %p681_p9 = scmp.ne.s32.totalorder %s111_s25, %s680_s30 }
  0x1a   : > { %p671_p8 = pneg %p900_p7  ;;  %p688_p12 = scmp.lt.s32.totalorder %s111_s25, %s111_s25 }
  0x1b   : > { %p689_p11 = scmp.lt.s32.totalorder %s680_s30, %s680_s30 }
  0x1c   : > { %p683_p10 = pnand %p681_p9, %p671_p8 }
  0x1d   : > { %p690_p2 = por %p689_p11, %p688_p12 }
  0x1e   : > { %p684_p1 = pneg %p683_p10 }
  0x20   : > { %p691_p0 = pnand %p690_p2, %p684_p1 }
  0x22   : > { %694 = shalt.err (!%p691_p0)
}
  0x23   : > { %602 = dma.hbm_to_vmem [thread:$0]  (!%p900_p7), %s1066_s1, 128, %s111_s25, [#allocation7]  }
  0x24   : > { %s562_s5 = sshll.u32 %s791_s12, 8  ;;  %s125_s6 = scalar_lea.vmem [#allocation3], %s550_s29 }
  0x25   : > { %s132_s7 = sshll.u32 %s125_s6, 4  ;;  %s922_s16 = scalar_lea.hbm %s1065_s0, %s562_s5  ;;  %s924_s7 = int_to_ptr.vmem [resolvable:$true] %s132_s7 }
  0x26   : > { %s926_s17 = scalar_lea.sflag [#allocation4], %s121_s27  ;;  %s695_s19 = scalar_lea.hbm %s922_s16, 256 }
  0x27   : > { %p696_p4 = scmp.ne.s32.totalorder %s922_s16, %s695_s19  ;;  %p697_p5 = pneg %p907_p3 }
  0x28   : > { %s700_s26 = scalar_lea.hbm %s1065_s0, 512  ;;  %p701_p1 = scmp.lt.s32.totalorder %s922_s16, %s1065_s0 }
  0x29   : > { %p698_p11 = pnand %p697_p5, %p696_p4  ;;  %p702_p7 = scmp.lt.s32.totalorder %s700_s26, %s695_s19 }
  0x2b   : > { %p699_p12 = pneg %p698_p11  ;;  %p703_p8 = por %p702_p7, %p701_p1 }
  0x2d   : > { %p704_p9 = pnand %p703_p8, %p699_p12 }
  0x2f   : > { %707 = shalt.err (!%p704_p9)
}
  0x30   : > { %s708_s27 = scalar_lea.vmem %s924_s7, 256  ;;  %s794_s3 = smov [#allocation3]  }
  0x31   : > { %p709_p10 = scmp.ne.s32.totalorder %s924_s7, %s708_s27  ;;  %s713_s4 = sshll.u32 %s794_s3, 4  ;;  %s714_s4 = int_to_ptr.vmem [resolvable:$false] %s713_s4 }
  0x32   : > { %s715_s5 = scalar_lea.vmem %s714_s4, 512  ;;  %p716_p4 = scmp.lt.s32.totalorder %s924_s7, %s714_s4 }
  0x33   : > { %p711_p2 = pnand %p709_p10, %p697_p5  ;;  %p717_p11 = scmp.lt.s32.totalorder %s715_s5, %s708_s27 }
  0x35   : > { %p712_p0 = pneg %p711_p2  ;;  %p718_p6 = por %p717_p11, %p716_p4 }
  0x37   : > { %p719_p13 = pnand %p718_p6, %p712_p0 }
  0x39   : > { %722 = shalt.err (!%p719_p13)
}
  0x3a   : > { %s795_s6 = smov 128   ;;  %s796_s8 = smov 8  }
  0x3b   : > { %606 = dma.hbm_to_vmem [thread:$0]  (!%p907_p3), %s922_s16, 256, %s924_s7, %s926_s17, %s795_s6, %s795_s6, %s796_s8  }
  0x3c   : > { %p1080_p5 = scmp.ne.s32.totalorder %s1076_s23, 0 }
  0x3d   : > { %s950_s14 = sand.u32 (!%p1080_p5), 1, %s783_s10   ;;  %p1081_p6 = scmp.ne.s32.totalorder (!%p1080_p5), %s1073_s20, 0 }
  0x3e   : > { %144 = sbr.rel (%p1080_p5) target bundleno = 1245 (0x4dd), region = 28  ;;  %s554_s19 = sshll.u32 (!%p1080_p5), %s950_s14, 4 }
  0x3f   : > { %s147_s24 = scalar_lea.sflag (!%p1080_p5), [#allocation4], %s950_s14  ;;  %s150_s25 = scalar_lea.vmem (!%p1080_p5), [#allocation3], %s554_s19 }
  0x43   : > { %766 = dma.done.wait (%p1081_p6), %s147_s24, 256  }
  0x44   : > { %768 = vsyncadd (%p1081_p6), %s147_s24, 4294967040  ;;  %p1082_p13 = scmp.eq.s32.totalorder %s851_s13, 0 }
  0x46   : > { %770 = dma.done.wait (%p1082_p13), [#allocation7], 128   ;;  %p1083_p3 = pmov %p1082_p13 }
  0x47   : > { %v797_v0 = vmov 0.0   ;;  %v205_v1 = vld [vmem:[%s150_s25 + $0x8] sm:$0xff]  ;;  %v204_v2 = vld [vmem:[%s150_s25] sm:$0xff]  ;;  %vm177_vm0 = vcmask 588800   ;;  %s798_s23 = smov 118   ;;  %s799_s28 = smov 119  }
  0x48   : > { %772 = vsyncadd (%p1083_p3), [#allocation7], 4294967168  ;;  %572 = vmatprep.subr.mxu0 %v797_v0  ;;  %210 = vrot.lane.b32.xlu0 %v205_v1, %s798_s23  ;;  %179 = vst.msk [vmem:[#allocation2 + $0x8] sm:$0xff] %vm177_vm0, %v205_v1  ;;  %s800_s20 = smov 127   ;;  %vm801_vm1 = vmmov 0   ;;  %v216_v17 = vld [vmem:[#allocation6] sm:$0xff] }
  0x49   : > { %198 = vrot.lane.b32.xlu1 %v205_v1, %s799_s28  ;;  %178 = vst.msk [vmem:[#allocation2] sm:$0xff] %vm177_vm0, %v204_v2  ;;  %588 = vmatprep.mubr.msk.f32.mxu0 %vm801_vm1, %v797_v0  ;;  %vm225_vm2 = vcmask 523264   ;;  %s802_s7 = smov 110   ;;  %s803_s16 = smov 92   ;;  %vm299_vm3 = vcmask 64512   ;;  %vm420_vm4 = vcmask 130112  }
  0x4a   : > { %s804_s17 = smov 101   ;;  %s805_s26 = smov 83   ;;  %vm425_vm5 = vcmask 195712   ;;  %vm430_vm6 = vcmask 261312   ;;  %vm435_vm7 = vcmask 326912   ;;  %vm440_vm8 = vcmask 392512  }
  0x4b   : > { %s806_s29 = smov 74   ;;  %s807_s30 = smov 65   ;;  %vm445_vm9 = vcmask 458112   ;;  %vm450_vm10 = vcmask 523712  }
  0x4c   : > { %208 = vrot.lane.b32.xlu0 %v204_v2, %s798_s23  ;;  %s556_s27 = sshll.u32 %s950_s14, 3  ;;  %s808_s3 = smov 126  }
  0x4d   : > { %196 = vrot.lane.b32.xlu1 %v204_v2, %s799_s28  ;;  %s1006_s4 = scalar_lea.vmem [#allocation8], %s556_s27  ;;  %s809_s5 = smov 123  }
  0x4e   : > { %s810_s6 = smov 125   ;;  %s811_s8 = smov 121  }
  0x4f   : > { %v218_v15 = vld [vmem:[#allocation2 + $0x8] sm:$0xff]  ;;  %s812_s19 = smov 124   ;;  %s813_s24 = smov 122  }
  0x50   : > { %186 = vrot.lane.b32.xlu0 %v205_v1, %s800_s20  ;;  %v217_v16 = vld [vmem:[#allocation2] sm:$0xff]  ;;  %s559_s25 = sshll.u32 %s851_s13, 7  ;;  %s466_s23 = sshll.u32 %s1006_s4, 4  ;;  %s1022_s23 = int_to_ptr.vmem [resolvable:$true] %s466_s23 }
  0x51   : > { %184 = vrot.lane.b32.xlu1 %v204_v2, %s800_s20  ;;  %s723_s13 = scalar_lea.vmem %s1022_s23, 128  ;;  %p1084_p1 = scmp.ne.s32.totalorder %s1074_s21, 0 }
  0x52   : > { %p724_p12 = scmp.ne.s32.totalorder %s1022_s23, %s723_s13 }
  0x54   : > { %p725_p7 = pnand %p724_p12, %p1084_p1 }
  0x56   : > { %p726_p8 = pneg %p725_p7 }
  0xba   : > { %v211_v3 = vpop.permute.xlu0 %210 }
  0xbb   : > { %v199_v4 = vpop.permute.xlu1 %198  ;;  %215 = vst.msk [vmem:[#allocation2 + $0x38] sm:$0xff] %vm177_vm0, %v211_v3 }
  0xbc   : > { %203 = vst.msk [vmem:[#allocation2 + $0x28] sm:$0xff] %vm177_vm0, %v199_v4 }
  0xbe   : > { %v209_v5 = vpop.permute.xlu0 %208 }
  0xbf   : > { %v197_v6 = vpop.permute.xlu1 %196  ;;  %214 = vst.msk [vmem:[#allocation2 + $0x30] sm:$0xff] %vm177_vm0, %v209_v5 }
  0xc0   : > { %202 = vst.msk [vmem:[#allocation2 + $0x20] sm:$0xff] %vm177_vm0, %v197_v6 }
  0xc2   : > { %v224_v7 = vld [vmem:[#allocation2 + $0x38] sm:$0xff]  ;;  %v187_v8 = vpop.permute.xlu0 %186 }
  0xc3   : > { %v185_v9 = vpop.permute.xlu1 %184  ;;  %573 = vmatpush3.msra.mxu0 %v224_v7  ;;  %191 = vst.msk [vmem:[#allocation2 + $0x18] sm:$0xff] %vm177_vm0, %v187_v8  ;;  %v222_v11 = vld [vmem:[#allocation2 + $0x28] sm:$0xff] }
  0xc4   : > { %190 = vst.msk [vmem:[#allocation2 + $0x10] sm:$0xff] %vm177_vm0, %v185_v9  ;;  %574 = vmatprep.subr.mxu0 %v797_v0 }
  0xc6   : > { %v223_v10 = vld [vmem:[#allocation2 + $0x30] sm:$0xff] }
  0xc7   : > { %575 = vmatpush3.msra.mxu0 %v223_v10  ;;  %v221_v12 = vld [vmem:[#allocation2 + $0x20] sm:$0xff] }
  0xc8   : > { %576 = vmatprep.subr.mxu0 %v797_v0 }
  0xc9   : > { %577 = vmatpush3.msra.mxu0 %v222_v11 }
  0xca   : > { %578 = vmatprep.subr.mxu0 %v797_v0  ;;  %v220_v13 = vld [vmem:[#allocation2 + $0x18] sm:$0xff] }
  0xcb   : > { %579 = vmatpush3.msra.mxu0 %v221_v12  ;;  %v219_v14 = vld [vmem:[#allocation2 + $0x10] sm:$0xff] }
  0xcc   : > { %580 = vmatprep.subr.mxu0 %v797_v0 }
  0xcd   : > { %581 = vmatpush3.msra.mxu0 %v220_v13 }
  0xce   : > { %582 = vmatprep.subr.mxu0 %v797_v0 }
  0xcf   : > { %583 = vmatpush3.msra.mxu0 %v219_v14 }
  0xd0   : > { %584 = vmatprep.subr.mxu0 %v797_v0 }
  0xd1   : > { %585 = vmatpush3.msra.mxu0 %v218_v15 }
  0xd2   : > { %586 = vmatprep.subr.mxu0 %v797_v0 }
  0xd3   : > { %587 = vmatpush3.msra.mxu0 %v217_v16 }
  0xd4   : > { %589 = vmatmul.mubr.msk.f32.vlgmr.msra.gmra.mxu0 %vm225_vm2, %v216_v17 }
 0x194   : > { %v295_v18 = vpop.f32.mrf.mxu0 }
 0x195   : > { %311 = vrot.lane.b32.xlu0 %v295_v18, %s802_s7  ;;  %304 = vrot.lane.b32.xlu1 %v295_v18, %s799_s28  ;;  %v300_v20 = vsel %vm299_vm3, %v295_v18, 0.0 }
 0x196   : > { %v590_v19 = vpop.f32.mrf.mxu0 }
 0x199   : > { %325 = vrot.lane.b32.xlu0 %v295_v18, %s803_s16  ;;  %318 = vrot.lane.b32.xlu1 %v295_v18, %s804_s17 }
 0x19d   : > { %332 = vrot.lane.b32.xlu0 %v295_v18, %s805_s26  ;;  %339 = vrot.lane.b32.xlu1 %v295_v18, %s806_s29 }
 0x1a1   : > { %346 = vrot.lane.b32.xlu0 %v295_v18, %s807_s30 }
 0x1c0   : > { %301 = vadd.xlane.f32.xlu0 %v300_v20 }
 0x207   : > { %v312_v21 = vpop.permute.xlu0 %311  ;;  %v305_v22 = vpop.permute.xlu1 %304 }
 0x208   : > { %v307_v23 = vsel %vm299_vm3, %v305_v22, 0.0  ;;  %v314_v26 = vsel %vm299_vm3, %v312_v21, 0.0 }
 0x209   : > { %308 = vadd.xlane.f32.xlu1 %v307_v23 }
 0x20b   : > { %v326_v24 = vpop.permute.xlu0 %325  ;;  %v319_v25 = vpop.permute.xlu1 %318 }
 0x20c   : > { %v321_v27 = vsel %vm299_vm3, %v319_v25, 0.0  ;;  %v328_v30 = vsel %vm299_vm3, %v326_v24, 0.0 }
 0x20d   : > { %315 = vadd.xlane.f32.xlu1 %v314_v26  ;;  %322 = vadd.xlane.f32.xlu0 %v321_v27 }
 0x20f   : > { %v333_v28 = vpop.permute.xlu0 %332  ;;  %v340_v31 = vpop.permute.xlu1 %339 }
 0x210   : > { %v335_v29 = vsel %vm299_vm3, %v333_v28, 0.0  ;;  %v342_v34 = vsel %vm299_vm3, %v340_v31, 0.0 }
 0x211   : > { %336 = vadd.xlane.f32.xlu1 %v335_v29  ;;  %329 = vadd.xlane.f32.xlu0 %v328_v30 }
 0x213   : > { %v347_v32 = vpop.permute.xlu0 %346 }
 0x214   : > { %v349_v33 = vsel %vm299_vm3, %v347_v32, 0.0 }
 0x215   : > { %350 = vadd.xlane.f32.xlu1 %v349_v33  ;;  %343 = vadd.xlane.f32.xlu0 %v342_v34 }
 0x249   : > { %v302_v35 = vpop.xlane.xlu0 %301 }
 0x292   : > { %v309_v36 = vpop.xlane.xlu1 %308 }
 0x293   : > { %v310_v37 = vadd.f32 %v309_v36, %v302_v35 }
 0x296   : > { %v316_v38 = vpop.xlane.xlu1 %315  ;;  %v323_v39 = vpop.xlane.xlu0 %322 }
 0x297   : > { %v317_v40 = vadd.f32 %v316_v38, %v310_v37 }
 0x299   : > { %v324_v41 = vadd.f32 %v323_v39, %v317_v40 }
 0x29a   : > { %v337_v42 = vpop.xlane.xlu1 %336  ;;  %v330_v43 = vpop.xlane.xlu0 %329 }
 0x29b   : > { %v331_v44 = vadd.f32 %v330_v43, %v324_v41 }
 0x29d   : > { %v338_v45 = vadd.f32 %v337_v42, %v331_v44 }
 0x29e   : > { %v344_v46 = vpop.xlane.xlu0 %343  ;;  %v351_v48 = vpop.xlane.xlu1 %350 }
 0x29f   : > { %v345_v47 = vadd.f32 %v344_v46, %v338_v45 }
 0x2a1   : > { %v352_v49 = vadd.f32 %v351_v48, %v345_v47 }
 0x2a3   : > { %v353_v50 = vmul.f32 0.015625, %v352_v49 }
 0x2a5   : > { %v354_v51 = vsub.f32 %v295_v18, %v353_v50 }
 0x2a7   : > { %v355_v52 = vmul.f32 %v354_v51, %v354_v51 }
 0x2a9   : > { %367 = vrot.lane.b32.xlu0 %v355_v52, %s802_s7  ;;  %360 = vrot.lane.b32.xlu1 %v355_v52, %s799_s28  ;;  %v356_v53 = vsel %vm299_vm3, %v355_v52, 0.0  ;;  %s1020_s7 = scalar_lea.hbm %s1067_s2, %s559_s25 }
 0x2ad   : > { %374 = vrot.lane.b32.xlu0 %v355_v52, %s804_s17  ;;  %381 = vrot.lane.b32.xlu1 %v355_v52, %s803_s16  ;;  %s453_s16 = scalar_lea.sflag [#allocation5], %s950_s14  ;;  %s814_s17 = smov [#allocation8]  }
 0x2b1   : > { %388 = vrot.lane.b32.xlu0 %v355_v52, %s805_s26  ;;  %395 = vrot.lane.b32.xlu1 %v355_v52, %s806_s29  ;;  %s727_s26 = sshll.u32 %s814_s17, 4  ;;  %s728_s26 = int_to_ptr.vmem [resolvable:$false] %s727_s26 }
 0x2b2   : > { %s729_s29 = scalar_lea.vmem %s728_s26, 256  ;;  %p730_p9 = scmp.lt.s32.totalorder %s1022_s23, %s728_s26 }
 0x2b3   : > { %p731_p10 = scmp.lt.s32.totalorder %s729_s29, %s723_s13 }
 0x2b5   : > { %p732_p2 = por %p731_p10, %p730_p9 }
 0x2b7   : > { %p733_p0 = pnand %p732_p2, %p726_p8 }
 0x2d0   : > { %357 = vadd.xlane.f32.xlu0 %v356_v53 }
 0x31b   : > { %v368_v54 = vpop.permute.xlu0 %367  ;;  %v361_v55 = vpop.permute.xlu1 %360 }
 0x31c   : > { %v370_v56 = vsel %vm299_vm3, %v368_v54, 0.0  ;;  %v363_v57 = vsel %vm299_vm3, %v361_v55, 0.0 }
 0x31d   : > { %371 = vadd.xlane.f32.xlu1 %v370_v56  ;;  %364 = vadd.xlane.f32.xlu0 %v363_v57 }
 0x31f   : > { %v375_v58 = vpop.permute.xlu0 %374  ;;  %v382_v59 = vpop.permute.xlu1 %381 }
 0x320   : > { %v377_v60 = vsel %vm299_vm3, %v375_v58, 0.0  ;;  %v384_v61 = vsel %vm299_vm3, %v382_v59, 0.0 }
 0x321   : > { %378 = vadd.xlane.f32.xlu0 %v377_v60 }
 0x323   : > { %v396_v62 = vpop.permute.xlu1 %395  ;;  %v389_v0 = vpop.permute.xlu0 %388 }
 0x324   : > { %v398_v63 = vsel %vm299_vm3, %v396_v62, 0.0  ;;  %v391_v1 = vsel %vm299_vm3, %v389_v0, 0.0 }
 0x325   : > { %385 = vadd.xlane.f32.xlu0 %v384_v61 }
 0x329   : > { %399 = vadd.xlane.f32.xlu0 %v398_v63 }
 0x32e   : > { %402 = vrot.lane.b32.xlu1 %v355_v52, %s807_s30 }
 0x352   : > { %392 = vadd.xlane.f32.xlu1 %v391_v1 }
 0x359   : > { %v358_v5 = vpop.xlane.xlu0 %357 }
 0x3a6   : > { %v372_v2 = vpop.xlane.xlu1 %371  ;;  %v365_v6 = vpop.xlane.xlu0 %364 }
 0x3a7   : > { %v366_v7 = vadd.f32 %v365_v6, %v358_v5 }
 0x3a9   : > { %v373_v9 = vadd.f32 %v372_v2, %v366_v7 }
 0x3aa   : > { %v403_v3 = vpop.permute.xlu1 %402  ;;  %v379_v8 = vpop.xlane.xlu0 %378 }
 0x3ab   : > { %v405_v4 = vsel %vm299_vm3, %v403_v3, 0.0  ;;  %v380_v11 = vadd.f32 %v379_v8, %v373_v9 }
 0x3ac   : > { %406 = vadd.xlane.f32.xlu1 %v405_v4 }
 0x3ae   : > { %v386_v10 = vpop.xlane.xlu0 %385 }
 0x3af   : > { %v387_v13 = vadd.f32 %v386_v10, %v380_v11 }
 0x3b2   : > { %v400_v15 = vpop.xlane.xlu0 %399 }
 0x3db   : > { %v393_v12 = vpop.xlane.xlu1 %392 }
 0x3dc   : > { %v394_v14 = vadd.f32 %v393_v12, %v387_v13 }
 0x3de   : > { %v401_v16 = vadd.f32 %v400_v15, %v394_v14 }
 0x435   : > { %v407_v17 = vpop.xlane.xlu1 %406 }
 0x436   : > { %v408_v18 = vadd.f32 %v407_v17, %v401_v16 }
 0x438   : > { %v409_v19 = vmul.f32 0.015625, %v408_v18 }
 0x43a   : > { %v410_v20 = vadd.f32 1e-05, %v409_v19 }
 0x43c   : > { %667 = vrsqrt.f32 %v410_v20 }
 0x449   : > { %v668_v21 = vpop.eup %667 }
 0x44a   : > { %v412_v22 = vmul.f32 %v668_v21, %v354_v51 }
 0x44c   : > { %v413_v23 = vmul.f32 0.2, %v412_v22 }
 0x44e   : > { %v414_v24 = vmax.f32 %v412_v22, %v413_v23 }
 0x450   : > { %422 = vrot.lane.b32.xlu0 %v414_v24, %s808_s3  ;;  %417 = vrot.lane.b32.xlu1 %v414_v24, %s800_s20  ;;  %415 = vst.msk [vmem:[%s1006_s4] sm:$0xff] %vm299_vm3, %v414_v24 }
 0x454   : > { %437 = vrot.lane.b32.xlu0 %v414_v24, %s809_s5  ;;  %427 = vrot.lane.b32.xlu1 %v414_v24, %s810_s6 }
 0x458   : > { %447 = vrot.lane.b32.xlu0 %v414_v24, %s811_s8  ;;  %432 = vrot.lane.b32.xlu1 %v414_v24, %s812_s19 }
 0x45c   : > { %442 = vrot.lane.b32.xlu1 %v414_v24, %s813_s24 }
 0x4c2   : > { %v423_v25 = vpop.permute.xlu0 %422  ;;  %v418_v26 = vpop.permute.xlu1 %417 }
 0x4c3   : > { %421 = vst.msk [vmem:[%s1006_s4] sm:$0xff] %vm420_vm4, %v418_v26 }
 0x4c4   : > { %426 = vst.msk [vmem:[%s1006_s4] sm:$0xff] %vm425_vm5, %v423_v25 }
 0x4c6   : > { %v428_v27 = vpop.permute.xlu1 %427  ;;  %v438_v28 = vpop.permute.xlu0 %437 }
 0x4c7   : > { %431 = vst.msk [vmem:[%s1006_s4] sm:$0xff] %vm430_vm6, %v428_v27 }
 0x4ca   : > { %v433_v29 = vpop.permute.xlu1 %432  ;;  %v448_v31 = vpop.permute.xlu0 %447 }
 0x4cb   : > { %436 = vst.msk [vmem:[%s1006_s4] sm:$0xff] %vm435_vm7, %v433_v29 }
 0x4cc   : > { %441 = vst.msk [vmem:[%s1006_s4] sm:$0xff] %vm440_vm8, %v438_v28 }
 0x4ce   : > { %v443_v30 = vpop.permute.xlu1 %442 }
 0x4cf   : > { %446 = vst.msk [vmem:[%s1006_s4] sm:$0xff] %vm445_vm9, %v443_v30 }
 0x4d0   : > { %451 = vst.msk [vmem:[%s1006_s4] sm:$0xff] %vm450_vm10, %v448_v31 }
 0x4d1   : > { %736 = shalt.err (!%p733_p0)
}
 0x4d2   : > { %s737_s30 = scalar_lea.hbm %s1020_s7, 128  ;;  %s741_s3 = scalar_lea.hbm %s1067_s2, 256 }
 0x4d3   : > { %p738_p4 = scmp.ne.s32.totalorder %s1020_s7, %s737_s30  ;;  %p742_p6 = scmp.lt.s32.totalorder %s1020_s7, %s1067_s2 }
 0x4d4   : > { %p743_p13 = scmp.lt.s32.totalorder %s741_s3, %s737_s30 }
 0x4d5   : > { %p739_p11 = pnand %p738_p4, %p1084_p1 }
 0x4d6   : > { %p744_p3 = por %p743_p13, %p742_p6 }
 0x4d7   : > { %p740_p5 = pneg %p739_p11 }
 0x4d9   : > { %p745_p12 = pnand %p744_p3, %p740_p5 }
 0x4db   : > { %748 = shalt.err (!%p745_p12)
}
 0x4dc   : > { %597 = dma.vmem_to_hbm [thread:$0]  (%p1084_p1), %s1022_s23, 128, %s1020_s7, %s453_s16  }
 0x4dd PF: > { %s478_s6 = sand.u32 1, %s779_s9   ;;  %p1085_p7 = scmp.ne.s32.totalorder %s1075_s22, 0 }
 0x4de   : > { %p1086_p8 = scmp.ge.s32.totalorder %s791_s12, 2  ;;  %s479_s8 = scalar_lea.sflag [#allocation5], %s478_s6 }
 0x4e0   : > { %p608_p9 = pnand %p1086_p8, %p1085_p7 }
 0x4e2   : > { %p609_p10 = pneg %p608_p9 }
 0x4e4   : > { %774 = dma.done.wait (%p609_p10), %s479_s8, 128  }
 0x4e5   : > { %776 = vsyncadd (%p609_p10), %s479_s8, 4294967168  ;;  %p16_p2 = scmp.ge.s32.totalorder %s855_s15, 4   ;;  %s1087_s9 = smov %s783_s10 }
 0x4e6   : > { %s1088_s10 = smov %s787_s11  ;;  %s1089_s11 = smov %s867_s18 }
 0x4e7   : > { %s1090_s12 = smov %s855_s15  ;;  %18 = sbr.rel (!%p16_p2) target bundleno = 6 (0x6), region = 77 }
 0x4ec   :  { %484 = vsyncpa [#allocation4], 1 }
 0x4ed   :  { %486 = vsyncpa [#allocation4 + $0x1], 1 }
 0x4ee   :  { %487 = vsyncpa [#allocation7], 1 }
 0x4ef   :  { %488 = vsyncpa [#allocation5], 1 }
 0x4f0   :  { %490 = vsyncpa [#allocation5 + $0x1], 1 }

</bundles_post_ra>
